<compile_context>
chip_gen: v7x
topology: tpu7x:2x2x1
jax: 0.10.0
libtpu: 0.0.40
codegen_flags: <defaults>
</compile_context>

<pallas_src>
import functools

import numpy as np

import jax
import jax.numpy as jnp
from jax.experimental import pallas as pl
from jax.experimental.pallas import tpu as pltpu


def _round_up(v, m):
    return -(-v // m) * m


def _conv_bn_relu_kernel(x_ref, sel_ref, w_ref, scale_ref, shift_ref, o_ref, *,
                         ks, t_out, t_in, b_tile, win_w):
    # x_ref:     (b_tile, c_in_pad, l_x_pad)   original (un-upsampled) input rows,
    #                                          resident across the L-tile grid axis
    # sel_ref:   (ks, win_w, t_out)            0/1 upsample+shift selection matrices
    # w_ref:     (c_out_pad, ks*c_in_pad)      conv weight, taps stacked along K
    # scale_ref: (c_out_pad, 1)                folded BatchNorm scale
    # shift_ref: (c_out_pad, 1)                folded conv-bias + BatchNorm shift
    # o_ref:     (b_tile, c_out_pad, t_out)    output tile
    li = pl.program_id(1)
    lane0 = pl.multiple_of(li * t_in, 128)     # 128-aligned window start into x

    w = w_ref[...]                             # loaded once per grid step
    scale = scale_ref[...]
    shift = shift_ref[...]

    stacks = []
    for b in range(b_tile):                    # short static unroll over the batch tile
        x_win = x_ref[b, :, pl.ds(lane0, win_w)]               # (c_in_pad, win_w)
        # Upsample-nearest + conv padding + tap shift, all as one-hot MXU matmuls
        # (MXU is otherwise idle on this mem-bound op).
        taps = [jnp.dot(x_win, sel_ref[k], preferred_element_type=jnp.float32)
                for k in range(ks)]                             # each (c_in_pad, t_out)
        stacks.append(jnp.concatenate(taps, axis=0))            # (ks*c_in_pad, t_out)

    rhs = stacks[0] if b_tile == 1 else jnp.concatenate(stacks, axis=1)
    rhs = rhs.astype(w.dtype)                                   # (ks*c_in_pad, b_tile*t_out)

    acc = jnp.dot(w, rhs, preferred_element_type=jnp.float32)   # (c_out_pad, b_tile*t_out)
    y = jnp.maximum(acc * scale + shift, 0.0)   # fused bias + BN(eval) + ReLU, one broadcast
    for b in range(b_tile):
        o_ref[b] = y[:, b * t_out:(b + 1) * t_out].astype(o_ref.dtype)


def conv1d_trans(x, weight, bias, gamma, beta, run_mean, run_var, *, ks, stride,
                 eps=1e-5, compute_dtype=jnp.float32):
    """Upsample(nearest, scale_factor=stride) -> Conv1d(nin, nout, ks, stride=1,
    padding=(ks-1)//2) -> BatchNorm1d(eval) -> ReLU.   x: (N, C_in, L) float32."""
    n, c_in, l = x.shape
    c_out = weight.shape[0]
    pad = (ks - 1) // 2
    l_up = l * stride
    l_out = l_up + 2 * pad - ks + 1

    itemsize = jnp.dtype(compute_dtype).itemsize
    # bf16 packs 16 rows per vreg -> keep the stacked-K granule dense.
    c_in_granule = 8 if itemsize == 4 else 16
    c_in_pad = _round_up(c_in, c_in_granule)
    c_out_pad = _round_up(c_out, 8)

    # --- batch tiling: >= 2 batch tiles whenever possible (v7x megacore shards batch)
    b_tile = max(1, min(4, n // 2))
    n_tiles_b = -(-n // b_tile)
    n_pad = n_tiles_b * b_tile

    # --- output lane tile: multiple of 128*stride so the input-window start stays
    #     128-lane aligned; capped at 512 lanes (v6e's 128 MiB VMEM could go to 1024).
    t_base = 128 * stride
    t_out = t_base
    while t_out * 2 <= 512 and t_out * 2 <= _round_up(l_out, t_base):
        t_out *= 2
    l_out_pad = _round_up(l_out, t_out)        # lane-dense output, sliced afterwards
    n_tiles_l = l_out_pad // t_out
    t_in = t_out // stride                     # multiple of 128

    # --- input-window geometry in original (un-upsampled) x coordinates -------------
    off_min = (-pad) // stride                 # most negative input offset (floor div)
    pad_left = -off_min
    max_rel = (t_out - 1 + ks - 1 - pad) // stride - off_min
    win_w = _round_up(max_rel + 1, 128)        # lane-dense window width
    l_x_pad = max((n_tiles_l - 1) * t_in + win_w, _round_up(pad_left + l, 128))

    # Pad the ORIGINAL x (no upsampled copy in HBM); cast to compute dtype here so the
    # kernel's input DMA is already narrow on the bf16 path.
    x_pad = jnp.pad(x, ((0, n_pad - n), (0, c_in_pad - c_in),
                        (pad_left, l_x_pad - pad_left - l))).astype(compute_dtype)

    # 0/1 selection matrices: sel[k, m, j] = 1 iff upsampled-padded sample (tile_j + k)
    # comes from window row m of the original signal.  Out-of-range samples hit the
    # zero padding of x_pad, so no masking is needed.
    jj = np.arange(t_out)
    sel_np = np.zeros((ks, win_w, t_out), dtype=np.float32)
    for k in range(ks):
        m = (jj + k - pad) // stride - off_min
        sel_np[k, m, jj] = 1.0
    sel = jnp.asarray(sel_np, dtype=compute_dtype)

    # Weight laid out as (c_out_pad, ks*c_in_pad): one dense MXU LHS.
    w = jnp.transpose(weight, (0, 2, 1)).astype(jnp.float32)      # (c_out, ks, c_in)
    w = jnp.pad(w, ((0, c_out_pad - c_out), (0, 0), (0, c_in_pad - c_in)))
    w = w.reshape(c_out_pad, ks * c_in_pad).astype(compute_dtype)

    # Fold conv bias + eval-mode BatchNorm into per-channel scale / shift.
    # TODO(synk): a freshly-constructed torch module runs BatchNorm1d in TRAIN mode
    # (batch statistics); this kernel uses the running-stats (eval) formulation.
    scale = (gamma / jnp.sqrt(run_var + eps)).astype(jnp.float32)
    shift = ((bias - run_mean) * scale + beta).astype(jnp.float32)
    scale = jnp.pad(scale, (0, c_out_pad - c_out)).reshape(c_out_pad, 1)
    shift = jnp.pad(shift, (0, c_out_pad - c_out)).reshape(c_out_pad, 1)

    kernel = functools.partial(_conv_bn_relu_kernel, ks=ks, t_out=t_out, t_in=t_in,
                               b_tile=b_tile, win_w=win_w)

    # VMEM budget: double-buffered input/output blocks + resident selection/weight
    # + in-kernel intermediates.  Capped at 48 MiB (headroom on v7x's 64 MiB VMEM).
    est_bytes = (2 * b_tile * c_in_pad * l_x_pad * itemsize
                 + 2 * b_tile * c_out_pad * t_out * 4
                 + 2 * ks * win_w * t_out * itemsize
                 + 2 * c_out_pad * ks * c_in_pad * itemsize
                 + 8 * c_out_pad * 4
                 + (ks + 2) * c_in_pad * b_tile * t_out * 4
                 + 2 * c_out_pad * b_tile * t_out * 4
                 + (1 << 20))
    vmem_limit = int(min(48 * 1024 * 1024, max(16 * 1024 * 1024, 2 * est_bytes)))

    flops = 2 * n_pad * n_tiles_l * (ks * c_in_pad * win_w * t_out
                                     + c_out_pad * ks * c_in_pad * t_out)
    bytes_accessed = int(n_pad * c_in_pad * l_x_pad * itemsize
                         + sel.size * itemsize + w.size * itemsize
                         + 8 * c_out_pad + n_pad * c_out_pad * l_out_pad * 4)
    cost = pl.CostEstimate(flops=flops, transcendentals=0,
                           bytes_accessed=bytes_accessed)

    out = pl.pallas_call(
        kernel,
        out_shape=jax.ShapeDtypeStruct((n_pad, c_out_pad, l_out_pad), x.dtype),
        grid_spec=pltpu.PrefetchScalarGridSpec(
            num_scalar_prefetch=0,
            grid=(n_tiles_b, n_tiles_l),
            in_specs=[
                # Full (un-upsampled) row per batch tile; block index ignores the L
                # axis, so it is DMA'd once per batch tile and reused across L tiles.
                pl.BlockSpec((b_tile, c_in_pad, l_x_pad), lambda bi, li: (bi, 0, 0)),
                pl.BlockSpec((ks, win_w, t_out), lambda bi, li: (0, 0, 0)),
                pl.BlockSpec((c_out_pad, ks * c_in_pad), lambda bi, li: (0, 0)),
                pl.BlockSpec((c_out_pad, 1), lambda bi, li: (0, 0)),
                pl.BlockSpec((c_out_pad, 1), lambda bi, li: (0, 0)),
            ],
            out_specs=pl.BlockSpec((b_tile, c_out_pad, t_out),
                                   lambda bi, li: (bi, 0, li)),
        ),
        compiler_params=pltpu.CompilerParams(
            dimension_semantics=("parallel", "arbitrary"),
            vmem_limit_bytes=vmem_limit),
        cost_estimate=cost,
    )(x_pad, sel, w, scale, shift)

    return out[:n, :c_out, :l_out]


def _reference(x, weight, bias, gamma, beta, run_mean, run_var, *, ks, stride,
               eps=1e-5):
    pad = (ks - 1) // 2
    x_up = jnp.repeat(x, stride, axis=-1)
    y = jax.lax.conv_general_dilated(
        x_up, weight, window_strides=(1,), padding=[(pad, pad)],
        dimension_numbers=("NCH", "OIH", "NCH"))
    y = y + bias[None, :, None]
    y = (y - run_mean[None, :, None]) / jnp.sqrt(run_var[None, :, None] + eps)
    y = y * gamma[None, :, None] + beta[None, :, None]
    return jnp.maximum(y, 0.0)


def _make_params(key, nin, nout, ks):
    kw, kb, kg, kbeta, km, kv = jax.random.split(key, 6)
    weight = 0.1 * jax.random.normal(kw, (nout, nin, ks), dtype=jnp.float32)
    bias = 0.1 * jax.random.normal(kb, (nout,), dtype=jnp.float32)
    gamma = 1.0 + 0.1 * jax.random.normal(kg, (nout,), dtype=jnp.float32)
    beta = 0.1 * jax.random.normal(kbeta, (nout,), dtype=jnp.float32)
    run_mean = 0.1 * jax.random.normal(km, (nout,), dtype=jnp.float32)
    run_var = 0.5 + 0.5 * jnp.abs(jax.random.normal(kv, (nout,), dtype=jnp.float32))
    return weight, bias, gamma, beta, run_mean, run_var


if __name__ == "__main__":
    key = jax.random.PRNGKey(0)
    k1, k2, k3 = jax.random.split(key, 3)

    # --- small shapes consistent with Conv1dTrans(nin=4, nout=8, ks=3, stride=2) ----
    N, NIN, NOUT, L, KS, STRIDE = 2, 4, 8, 16, 3, 2
    x = jax.random.normal(k1, (N, NIN, L), dtype=jnp.float32)
    params = _make_params(k2, NIN, NOUT, KS)

    out = conv1d_trans(x, *params, ks=KS, stride=STRIDE)
    out = jax.block_until_ready(out)
    ref = _reference(x, *params, ks=KS, stride=STRIDE)
    assert out.shape == (N, NOUT, L * STRIDE), out.shape
    assert jnp.allclose(out, ref, rtol=1e-3, atol=1e-3), \
        float(jnp.max(jnp.abs(out - ref)))

    # bf16 MXU path (v6e/v7x): f32 accumulation, so only slightly looser tolerance.
    out_bf16 = conv1d_trans(x, *params, ks=KS, stride=STRIDE,
                            compute_dtype=jnp.bfloat16)
    out_bf16 = jax.block_until_ready(out_bf16)
    assert jnp.allclose(out_bf16, ref, rtol=2e-2, atol=2e-2), \
        float(jnp.max(jnp.abs(out_bf16 - ref)))

    # --- second check exercising b_tile>1 (batch-folded matmul), >1 L tile and
    #     non-multiple channel padding ---------------------------------------------
    N2, NIN2, NOUT2, L2 = 5, 3, 6, 512
    x2 = jax.random.normal(k3, (N2, NIN2, L2), dtype=jnp.float32)
    params2 = _make_params(k2, NIN2, NOUT2, KS)
    out2 = conv1d_trans(x2, *params2, ks=KS, stride=STRIDE)
    out2 = jax.block_until_ready(out2)
    ref2 = _reference(x2, *params2, ks=KS, stride=STRIDE)
    assert out2.shape == (N2, NOUT2, L2 * STRIDE), out2.shape
    assert jnp.allclose(out2, ref2, rtol=1e-3, atol=1e-3), \
        float(jnp.max(jnp.abs(out2 - ref2)))

    print("KERNEL_OK")
</pallas_src>

<mosaic_0001>
module attributes {stable_mosaic.version = 11 : i64} {
  func.func @_conv_bn_relu_kernel(%arg0: i32, %arg1: i32, %arg2: memref<1x8x256xf32, #tpu.memory_space<vmem>>, %arg3: memref<3x256x256xf32, #tpu.memory_space<vmem>>, %arg4: memref<8x24xf32, #tpu.memory_space<vmem>>, %arg5: memref<8x1xf32, #tpu.memory_space<vmem>>, %arg6: memref<8x1xf32, #tpu.memory_space<vmem>>, %arg7: memref<1x8x256xf32, #tpu.memory_space<vmem>>) attributes {dimension_semantics = [#tpu.dimension_semantics<parallel>, #tpu.dimension_semantics<arbitrary>], iteration_bounds = array<i64: 2, 1>, scalar_prefetch = 0 : i64, scratch_operands = 0 : i64, tpu.core_type = #tpu.core_type<tc>, window_params = [{transform_indices = @transform_0, window_bounds = array<i64: 1, 8, 256>}, {pipeline_mode = #tpu.pipeline_mode<synchronous>, transform_indices = @transform_1, window_bounds = array<i64: 3, 256, 256>}, {pipeline_mode = #tpu.pipeline_mode<synchronous>, transform_indices = @transform_2, window_bounds = array<i64: 8, 24>}, {pipeline_mode = #tpu.pipeline_mode<synchronous>, transform_indices = @transform_3, window_bounds = array<i64: 8, 1>}, {pipeline_mode = #tpu.pipeline_mode<synchronous>, transform_indices = @transform_4, window_bounds = array<i64: 8, 1>}, {transform_indices = @transform_5, window_bounds = array<i64: 1, 8, 256>}]} {
    %c128_i32 = arith.constant 128 : i32
    %0 = arith.muli %arg1, %c128_i32 : i32
    %1 = tpu.assume_multiple %0, 128 : i32
    %c0 = arith.constant 0 : index
    %c0_0 = arith.constant 0 : index
    %2 = vector.load %arg4[%c0, %c0_0] : memref<8x24xf32, #tpu.memory_space<vmem>>, vector<8x24xf32>
    %c0_1 = arith.constant 0 : index
    %c0_2 = arith.constant 0 : index
    %3 = vector.load %arg5[%c0_1, %c0_2] : memref<8x1xf32, #tpu.memory_space<vmem>>, vector<8x1xf32>
    %c0_3 = arith.constant 0 : index
    %c0_4 = arith.constant 0 : index
    %4 = vector.load %arg6[%c0_3, %c0_4] : memref<8x1xf32, #tpu.memory_space<vmem>>, vector<8x1xf32>
    %c0_5 = arith.constant 0 : index
    %c0_6 = arith.constant 0 : index
    %5 = arith.index_cast %1 : i32 to index
    %6 = vector.load %arg2[%c0_5, %c0_6, %5] : memref<1x8x256xf32, #tpu.memory_space<vmem>>, vector<1x8x256xf32>
    %7 = vector.shape_cast %6 : vector<1x8x256xf32> to vector<8x256xf32>
    %c0_7 = arith.constant 0 : index
    %c0_8 = arith.constant 0 : index
    %c0_9 = arith.constant 0 : index
    %8 = vector.load %arg3[%c0_7, %c0_8, %c0_9] : memref<3x256x256xf32, #tpu.memory_space<vmem>>, vector<1x256x256xf32>
    %9 = vector.shape_cast %8 : vector<1x256x256xf32> to vector<256x256xf32>
    %cst = arith.constant dense<0.000000e+00> : vector<8x256xf32>
    %10 = tpu.matmul %7, %9, %cst {dimension_numbers = #tpu.dot_dimension_numbers<[1], [0], [0], [1], [0, 0, 1, 1], [], []>} : vector<8x256xf32>, vector<256x256xf32>, vector<8x256xf32> -> vector<8x256xf32>
    %c1 = arith.constant 1 : index
    %c0_10 = arith.constant 0 : index
    %c0_11 = arith.constant 0 : index
    %11 = vector.load %arg3[%c1, %c0_10, %c0_11] : memref<3x256x256xf32, #tpu.memory_space<vmem>>, vector<1x256x256xf32>
    %12 = vector.shape_cast %11 : vector<1x256x256xf32> to vector<256x256xf32>
    %cst_12 = arith.constant dense<0.000000e+00> : vector<8x256xf32>
    %13 = tpu.matmul %7, %12, %cst_12 {dimension_numbers = #tpu.dot_dimension_numbers<[1], [0], [0], [1], [0, 0, 1, 1], [], []>} : vector<8x256xf32>, vector<256x256xf32>, vector<8x256xf32> -> vector<8x256xf32>
    %c2 = arith.constant 2 : index
    %c0_13 = arith.constant 0 : index
    %c0_14 = arith.constant 0 : index
    %14 = vector.load %arg3[%c2, %c0_13, %c0_14] : memref<3x256x256xf32, #tpu.memory_space<vmem>>, vector<1x256x256xf32>
    %15 = vector.shape_cast %14 : vector<1x256x256xf32> to vector<256x256xf32>
    %cst_15 = arith.constant dense<0.000000e+00> : vector<8x256xf32>
    %16 = tpu.matmul %7, %15, %cst_15 {dimension_numbers = #tpu.dot_dimension_numbers<[1], [0], [0], [1], [0, 0, 1, 1], [], []>} : vector<8x256xf32>, vector<256x256xf32>, vector<8x256xf32> -> vector<8x256xf32>
    %17 = tpu.concatenate %10, %13, %16 in 0 : vector<8x256xf32>, vector<8x256xf32>, vector<8x256xf32> -> vector<24x256xf32>
    %cst_16 = arith.constant dense<0.000000e+00> : vector<8x256xf32>
    %18 = tpu.matmul %2, %17, %cst_16 {dimension_numbers = #tpu.dot_dimension_numbers<[1], [0], [0], [1], [0, 0, 1, 1], [], []>} : vector<8x24xf32>, vector<24x256xf32>, vector<8x256xf32> -> vector<8x256xf32>
    %19 = vector.broadcast %3 : vector<8x1xf32> to vector<8x256xf32>
    %20 = arith.mulf %18, %19 : vector<8x256xf32>
    %21 = vector.broadcast %4 : vector<8x1xf32> to vector<8x256xf32>
    %22 = arith.addf %20, %21 : vector<8x256xf32>
    %cst_17 = arith.constant 0.000000e+00 : f32
    %23 = vector.broadcast %cst_17 : f32 to vector<8x256xf32>
    %24 = arith.maximumf %22, %23 : vector<8x256xf32>
    %c0_18 = arith.constant 0 : index
    %c0_19 = arith.constant 0 : index
    %c0_20 = arith.constant 0 : index
    %25 = vector.load %arg7[%c0_18, %c0_19, %c0_20] : memref<1x8x256xf32, #tpu.memory_space<vmem>>, vector<1x8x256xf32>
    %26 = vector.shape_cast %25 : vector<1x8x256xf32> to vector<8x256xf32>
    %27 = vector.shape_cast %24 : vector<8x256xf32> to vector<1x8x256xf32>
    tpu.vector_store %arg7[%c0_18, %c0_19, %c0_20], %27 {strides = array<i32>} : memref<1x8x256xf32, #tpu.memory_space<vmem>>, vector<1x8x256xf32>,
    return
  }
  func.func @transform_0(%arg0: i32, %arg1: i32) -> (i32, i32, i32) {
    %c0_i32 = arith.constant 0 : i32
    %c0_i32_0 = arith.constant 0 : i32
    %c0_i32_1 = arith.constant 0 : i32
    return %arg0, %c0_i32, %c0_i32_0 : i32, i32, i32
  }
  func.func @transform_1(%arg0: i32, %arg1: i32) -> (i32, i32, i32) {
    %c0_i32 = arith.constant 0 : i32
    %c0_i32_0 = arith.constant 0 : i32
    %c0_i32_1 = arith.constant 0 : i32
    %c0_i32_2 = arith.constant 0 : i32
    return %c0_i32, %c0_i32_0, %c0_i32_1 : i32, i32, i32
  }
  func.func @transform_2(%arg0: i32, %arg1: i32) -> (i32, i32) {
    %c0_i32 = arith.constant 0 : i32
    %c0_i32_0 = arith.constant 0 : i32
    %c0_i32_1 = arith.constant 0 : i32
    return %c0_i32, %c0_i32_0 : i32, i32
  }
  func.func @transform_3(%arg0: i32, %arg1: i32) -> (i32, i32) {
    %c0_i32 = arith.constant 0 : i32
    %c0_i32_0 = arith.constant 0 : i32
    %c0_i32_1 = arith.constant 0 : i32
    return %c0_i32, %c0_i32_0 : i32, i32
  }
  func.func @transform_4(%arg0: i32, %arg1: i32) -> (i32, i32) {
    %c0_i32 = arith.constant 0 : i32
    %c0_i32_0 = arith.constant 0 : i32
    %c0_i32_1 = arith.constant 0 : i32
    return %c0_i32, %c0_i32_0 : i32, i32
  }
  func.func @transform_5(%arg0: i32, %arg1: i32) -> (i32, i32, i32) {
    %c0_i32 = arith.constant 0 : i32
    %c0_i32_0 = arith.constant 0 : i32
    return %arg0, %c0_i32, %arg1 : i32, i32, i32
  }
}

</mosaic_0001>

<bundles_post_ra>
// kernel: tpu_custom_call.1
= control target key start
LH: loop header
LB: loop body
LE: loop exit
PB: predicated region body
PF: predicated region fallthrough
CT: control target
= control target key end

     0   :  { %10 = vsyncpa [#allocation3], 0  ;;  %s1609_s0 = inlined_call_operand.hbm [shape: f32[2,8,256], index: 0, kind: input, shape index: {}]   ;;  %s1610_s1 = inlined_call_operand.hbm [shape: f32[3,256,256], index: 1, kind: input, shape index: {}]   ;;  %s1611_s2 = inlined_call_operand.vmem [shape: f32[8,24], index: 2, kind: input, shape index: {}]   ;;  %s1612_s3 = inlined_call_operand.vmem [shape: f32[8,1], index: 3, kind: input, shape index: {}]   ;;  %s1613_s4 = inlined_call_operand.vmem [shape: f32[8,1], index: 4, kind: input, shape index: {}]   ;;  %s1614_s5 = inlined_call_operand.hbm [shape: f32[2,8,256], index: 5, kind: output, shape index: {}]  }
   0x1   :  { %12 = vsyncpa [#allocation3 + $0x1], 0 }
   0x2   :  { %13 = vsyncpa [#allocation6], 0 }
   0x3   :  { %14 = vsyncpa [#allocation4], 0 }
   0x4   :  { %16 = vsyncpa [#allocation4 + $0x1], 0  ;;  %s1368_s18 = smov 0   ;;  %s1370_s19 = smov 0  }
   0x5   :  { %s1372_s20 = smov 0   ;;  %s1374_s21 = smov 0  }
   0x6   :  { %s1376_s22 = smov 0   ;;  %s1378_s23 = smov 0  }
   0x7 LB: > { %s891_s24 = sadd.s32 4294967295, %s1329_s23   ;;  %s892_s25 = sadd.s32 4294967294, %s1329_s23   ;;  %s1329_s23 = sphi %s1378_s23, %s22_s23   ;;  %s1325_s22 = sphi %s1376_s22, %s1638_s22   ;;  %s1321_s21 = sphi %s1374_s21, %s1637_s21   ;;  %s1317_s20 = sphi %s1372_s20, %s1636_s20   ;;  %s1313_s19 = sphi %s1370_s19, %s1635_s19   ;;  %s1309_s18 = sphi %s1368_s18, %s1634_s18  }
   0x8   : > { %p54_p0 = scmp.ne.s32.totalorder %s1313_s19, %s1309_s18  ;;  %p1402_p1 = scmp.eq.s32.totalorder %s891_s24, 0 }
   0x9   : > { %p1406_p2 = scmp.eq.s32.totalorder %s891_s24, 1  ;;  %p170_p3 = scmp.eq.s32.totalorder %s892_s25, 1 }
   0xa   : > { %s1619_s26 = scalar_select %p1402_p1, 1, 0 }
   0xb   : > { %s1620_s27 = scalar_select %p1406_p2, 1, 0 }
   0xc   : > { %p1412_p4 = por %p1402_p1, %p54_p0  ;;  %p893_p5 = scmp.ge.s32.totalorder %s1329_s23, 1 }
   0xd   : > { %p1417_p6 = por %p170_p3, %p54_p0  ;;  %p177_p7 = scmp.lt.s32.totalorder %s1329_s23, 3 }
   0xe   : > { %s1621_s28 = scalar_select %p1412_p4, 1, 0 }
   0xf   : > { %s1622_s29 = scalar_select %p1417_p6, 1, 0 }
  0x10   : > { %p1422_p8 = pnand %p893_p5, %p177_p7  ;;  %s1331_s6 = smov [#allocation5]  }
  0x11   : > { %s189_s7 = sshll.u32 %s1331_s6, 4  ;;  %s34_s9 = sadd.s32 1, %s1325_s22  ;;  %s190_s7 = int_to_ptr.vmem [resolvable:$true] %s189_s7 }
  0x12   : > { %s1623_s30 = scalar_select %p1422_p8, 1, 0 }
  0x13   : > { %p1115_p9 = pneg %p1422_p8  ;;  %s1185_s12 = scalar_lea.hbm %s1610_s1, 24576 }
  0x14   : > { %p1186_p12 = scmp.ne.s32.totalorder %s1610_s1, %s1185_s12  ;;  %p1192_p5 = scmp.lt.u32.totalorder %s1185_s12, %s1610_s1 }
  0x15   : > { %p1431_p11 = pnand %p1115_p9, %p1402_p1 }
  0x17   : > { %p1187_p13 = pneg %p1431_p11 }
  0x19   : > { %p1188_p0 = pnand %p1187_p13, %p1186_p12 }
  0x1b   : > { %p1189_p3 = pneg %p1188_p0 }
  0x1d   : > { %p1194_p7 = pnand %p1192_p5, %p1189_p3 }
  0x1f   : > { %1197 = shalt.err (!%p1194_p7)
}
  0x20   : > { %s1198_s17 = scalar_lea.vmem %s190_s7, 24576  ;;  %p1206_p1 = scmp.lt.s32.totalorder %s190_s7, %s190_s7 }
  0x21   : > { %p1199_p9 = scmp.ne.s32.totalorder %s190_s7, %s1198_s17  ;;  %p1207_p4 = scmp.lt.s32.totalorder %s1198_s17, %s1198_s17 }
  0x23   : > { %p1201_p10 = pnand %p1199_p9, %p1187_p13  ;;  %p1208_p8 = por %p1207_p4, %p1206_p1 }
  0x25   : > { %p1202_p6 = pneg %p1201_p10 }
  0x27   : > { %p1209_p2 = pnand %p1208_p8, %p1202_p6 }
  0x29   : > { %1212 = shalt.err (!%p1209_p2)
}
  0x2a   : > { %s1332_s24 = smov 256   ;;  %s1333_s25 = smov 16  }
  0x2b   : > { %1118 = dma.hbm_to_vmem [thread:$0]  (!%p1431_p11), %s1610_s1, 24576, %s190_s7, [#allocation6], %s1332_s24, %s1332_s24, %s1333_s25  }
  0x2c   : > { %p36_p1 = scmp.ge.s32.totalorder %s34_s9, 2  ;;  %s41_s11 = sadd.s32 1, %s1317_s20 }
  0x2d   : > { %p48_p2 = scmp.ne.s32.totalorder %s1317_s20, %s1313_s19  ;;  %p49_p4 = scmp.eq.s32.totalorder %s1329_s23, 0 }
  0x2e   : > { %s1640_s9 = smov (%p36_p1, %s34_s9), 0  ;;  %p1626_p8 = scmp.ne.s32.totalorder %s1620_s27, 0 }
  0x2f   : > { %p1458_p6 = por %p49_p4, %p48_p2  ;;  %s38_s8 = ssub.s32 %s1325_s22, %s1640_s9 }
  0x30   : > { %p1464_p10 = por %p1626_p8, %p48_p2  ;;  %p1128_p12 = scmp.lt.s32.totalorder %s1329_s23, 2 }
  0x31   : > { %p39_p11 = scmp.eq.s32.totalorder %s38_s8, 0  ;;  %s212_s7 = sand.u32 1, %s1317_s20  }
  0x32   : > { %s896_s14 = sshll.u32 %s212_s7, 4  ;;  %s909_s16 = sshll.u32 %s1325_s22, 8 }
  0x33   : > { %s1473_s15 = scalar_select %p39_p11, %s1317_s20, %s41_s11  }
  0x34   : > { %s1479_s25 = scalar_lea.hbm %s1609_s0, %s909_s16  ;;  %s216_s27 = scalar_lea.vmem [#allocation2], %s896_s14 }
  0x35   : > { %s224_s6 = sshll.u32 %s216_s27, 4  ;;  %p1485_p13 = pnand %p1128_p12, %p1458_p6  ;;  %s1481_s6 = int_to_ptr.vmem [resolvable:$true] %s224_s6 }
  0x36   : > { %s213_s11 = scalar_lea.sflag [#allocation3], %s212_s7  ;;  %s1213_s8 = scalar_lea.hbm %s1479_s25, 256 }
  0x37   : > { %p1214_p0 = scmp.ne.s32.totalorder %s1479_s25, %s1213_s8  ;;  %p1215_p3 = pneg %p1485_p13 }
  0x38   : > { %s1218_s17 = scalar_lea.hbm %s1609_s0, 512  ;;  %p1219_p9 = scmp.lt.u32.totalorder %s1479_s25, %s1609_s0 }
  0x39   : > { %p1216_p5 = pnand %p1215_p3, %p1214_p0  ;;  %p1220_p1 = scmp.lt.u32.totalorder %s1218_s17, %s1213_s8 }
  0x3a   : > { %p1222_p4 = scmp.lt.u32.totalorder %s1213_s8, %s1479_s25 }
  0x3b   : > { %p1217_p7 = pneg %p1216_p5  ;;  %p1221_p2 = por %p1220_p1, %p1219_p9 }
  0x3d   : > { %p1223_p6 = por %p1222_p4, %p1221_p2 }
  0x3f   : > { %p1224_p8 = pnand %p1223_p6, %p1217_p7 }
  0x41   : > { %1227 = shalt.err (!%p1224_p8)
}
  0x42   : > { %s1228_s7 = scalar_lea.vmem %s1481_s6, 256  ;;  %s1334_s27 = smov [#allocation2]  }
  0x43   : > { %p1229_p12 = scmp.ne.s32.totalorder %s1481_s6, %s1228_s7  ;;  %s1233_s14 = sshll.u32 %s1334_s27, 4  ;;  %s1234_s14 = int_to_ptr.vmem [resolvable:$false] %s1233_s14 }
  0x44   : > { %s1235_s16 = scalar_lea.vmem %s1234_s14, 512  ;;  %p1236_p5 = scmp.lt.s32.totalorder %s1481_s6, %s1234_s14 }
  0x45   : > { %p1231_p11 = pnand %p1229_p12, %p1215_p3  ;;  %p1237_p9 = scmp.lt.s32.totalorder %s1235_s16, %s1228_s7 }
  0x47   : > { %p1232_p0 = pneg %p1231_p11  ;;  %p1238_p1 = por %p1237_p9, %p1236_p5 }
  0x49   : > { %p1239_p2 = pnand %p1238_p1, %p1232_p0 }
  0x4b   : > { %1242 = shalt.err (!%p1239_p2)
}
  0x4c   : > { %1122 = dma.hbm_to_vmem [thread:$0]  (!%p1485_p13), %s1479_s25, 256, %s1481_s6, %s213_s11  }
  0x4d   : > { %p1629_p7 = scmp.ne.s32.totalorder %s1623_s30, 0 }
  0x4e   : > { %s1517_s8 = sand.u32 (!%p1629_p7), 1, %s1313_s19   ;;  %p1630_p3 = scmp.ne.s32.totalorder (!%p1629_p7), %s1621_s28, 0 }
  0x4f   : > { %233 = sbr.rel (%p1629_p7) target bundleno = 670 (0x29e), region = 40  ;;  %s900_s17 = sshll.u32 (!%p1629_p7), %s1517_s8, 4 }
  0x50   : > { %s236_s12 = scalar_lea.sflag (!%p1629_p7), [#allocation3], %s1517_s8  ;;  %s1523_s24 = scalar_lea.vmem (!%p1629_p7), [#allocation2], %s900_s17 }
  0x56   : > { %1296 = dma.done.wait (%p1630_p3), %s236_s12, 256  }
  0x57   : > { %1298 = vsyncadd (%p1630_p3), %s236_s12, 4294967040  ;;  %p1631_p13 = scmp.ne.s32.totalorder %s1619_s26, 0 }
  0x59   : > { %1300 = dma.done.wait (%p1631_p13), [#allocation6], 24576  }
  0x5a   : > { %1302 = vsyncadd (%p1631_p13), [#allocation6], 4294942720  ;;  %v282_v0 = vld [vmem:[#allocation5 + $0x8] sm:$0xff]  ;;  %v284_v1 = vld [vmem:[#allocation5 + $0x18] sm:$0xff]  ;;  %vm688_vm0 = vcmask 195584   ;;  %s910_s11 = sshll.u32 %s1321_s21, 8 }
  0x5b   : > { %v418_v2 = vld [vmem:[#allocation5 + $0x208] sm:$0xff]  ;;  %v911_v3 = vpack.c.bf16 %v284_v1, %v282_v0  ;;  %v420_v4 = vld [vmem:[#allocation5 + $0x218] sm:$0xff]  ;;  %v281_v5 = vld [vmem:[#allocation5] sm:$0xff]  ;;  %s269_s7 = scalar_lea.vmem [#allocation7], %s900_s17  ;;  %s1560_s12 = scalar_lea.hbm %s1614_s5, %s910_s11 }
  0x5c   : > { %v283_v6 = vld [vmem:[#allocation5 + $0x10] sm:$0xff]  ;;  %v975_v7 = vpack.c.bf16 %v420_v4, %v418_v2  ;;  %v417_v9 = vld [vmem:[#allocation5 + $0x200] sm:$0xff]  ;;  %v286_v11 = vld [vmem:[#allocation5 + $0x28] sm:$0xff]  ;;  %s798_s27 = sshll.u32 %s269_s7, 4  ;;  %s1337_s17 = smov [#allocation7]   ;;  %s1562_s27 = int_to_ptr.vmem [resolvable:$true] %s798_s27 }
  0x5d   : > { %v913_v8 = vpack.c.bf16 %v283_v6, %v281_v5  ;;  %v419_v10 = vld [vmem:[#allocation5 + $0x210] sm:$0xff]  ;;  %912 = vmatprep.subr.bf16.mxu0 %v911_v3  ;;  %v288_v13 = vld [vmem:[#allocation5 + $0x38] sm:$0xff]  ;;  %v422_v14 = vld [vmem:[#allocation5 + $0x228] sm:$0xff]  ;;  %s1243_s21 = scalar_lea.vmem %s1562_s27, 256  ;;  %s1247_s26 = sshll.u32 %s1337_s17, 4  ;;  %s1248_s26 = int_to_ptr.vmem [resolvable:$false] %s1247_s26 }
  0x5e   : > { %v977_v12 = vpack.c.bf16 %v419_v10, %v417_v9  ;;  %v424_v15 = vld [vmem:[#allocation5 + $0x238] sm:$0xff]  ;;  %976 = vmatprep.subr.bf16.mxu1 %v975_v7  ;;  %v915_v16 = vpack.c.bf16 %v288_v13, %v286_v11  ;;  %v285_v18 = vld [vmem:[#allocation5 + $0x20] sm:$0xff]  ;;  %v287_v19 = vld [vmem:[#allocation5 + $0x30] sm:$0xff]  ;;  %p1244_p4 = scmp.ne.s32.totalorder %s1562_s27, %s1243_s21  ;;  %s1249_s28 = scalar_lea.vmem %s1248_s26, 512 }
  0x5f   : > { %914 = vmatpush1.bf16.msra.mxu0 %v913_v8  ;;  %v979_v17 = vpack.c.bf16 %v424_v15, %v422_v14  ;;  %v421_v20 = vld [vmem:[#allocation5 + $0x220] sm:$0xff]  ;;  %v917_v21 = vpack.c.bf16 %v287_v19, %v285_v18  ;;  %v423_v22 = vld [vmem:[#allocation5 + $0x230] sm:$0xff]  ;;  %v290_v23 = vld [vmem:[#allocation5 + $0x48] sm:$0xff]  ;;  %p1250_p12 = scmp.lt.s32.totalorder %s1562_s27, %s1248_s26  ;;  %p1251_p11 = scmp.lt.s32.totalorder %s1249_s28, %s1243_s21 }
  0x60   : > { %978 = vmatpush1.bf16.msra.mxu1 %v977_v12  ;;  %v292_v24 = vld [vmem:[#allocation5 + $0x58] sm:$0xff]  ;;  %916 = vmatprep.subr.bf16.mxu0 %v915_v16  ;;  %v981_v25 = vpack.c.bf16 %v423_v22, %v421_v20  ;;  %v426_v27 = vld [vmem:[#allocation5 + $0x248] sm:$0xff]  ;;  %v289_v29 = vld [vmem:[#allocation5 + $0x40] sm:$0xff]  ;;  %p1245_p6 = pnand %p1244_p4, %p1464_p10 }
  0x61   : > { %980 = vmatprep.subr.bf16.mxu1 %v979_v17  ;;  %v919_v26 = vpack.c.bf16 %v292_v24, %v290_v23  ;;  %v428_v28 = vld [vmem:[#allocation5 + $0x258] sm:$0xff]  ;;  %v291_v31 = vld [vmem:[#allocation5 + $0x50] sm:$0xff]  ;;  %v425_v32 = vld [vmem:[#allocation5 + $0x240] sm:$0xff]  ;;  %p1252_p0 = por %p1251_p11, %p1250_p12 }
  0x62   : > { %v983_v30 = vpack.c.bf16 %v428_v28, %v426_v27  ;;  %v427_v33 = vld [vmem:[#allocation5 + $0x250] sm:$0xff]  ;;  %v921_v34 = vpack.c.bf16 %v291_v31, %v289_v29  ;;  %v294_v35 = vld [vmem:[#allocation5 + $0x68] sm:$0xff]  ;;  %v296_v36 = vld [vmem:[#allocation5 + $0x78] sm:$0xff]  ;;  %p1246_p8 = pneg %p1245_p6 }
  0x63   : > { %918 = vmatpush1.bf16.msra.mxu0 %v917_v21  ;;  %v430_v37 = vld [vmem:[#allocation5 + $0x268] sm:$0xff]  ;;  %v985_v38 = vpack.c.bf16 %v427_v33, %v425_v32  ;;  %v923_v39 = vpack.c.bf16 %v296_v36, %v294_v35  ;;  %v432_v40 = vld [vmem:[#allocation5 + $0x278] sm:$0xff]  ;;  %v293_v41 = vld [vmem:[#allocation5 + $0x60] sm:$0xff] }
  0x64   : > { %982 = vmatpush1.bf16.msra.mxu1 %v981_v25  ;;  %920 = vmatprep.subr.bf16.mxu0 %v919_v26  ;;  %v295_v42 = vld [vmem:[#allocation5 + $0x70] sm:$0xff]  ;;  %v987_v43 = vpack.c.bf16 %v432_v40, %v430_v37  ;;  %v429_v44 = vld [vmem:[#allocation5 + $0x260] sm:$0xff]  ;;  %v298_v46 = vld [vmem:[#allocation5 + $0x88] sm:$0xff]  ;;  %p1253_p5 = pnand %p1252_p0, %p1246_p8 }
  0x65   : > { %984 = vmatprep.subr.bf16.mxu1 %v983_v30  ;;  %v431_v45 = vld [vmem:[#allocation5 + $0x270] sm:$0xff]  ;;  %v300_v47 = vld [vmem:[#allocation5 + $0x98] sm:$0xff]  ;;  %v434_v48 = vld [vmem:[#allocation5 + $0x288] sm:$0xff]  ;;  %v925_v50 = vpack.c.bf16 %v295_v42, %v293_v41 }
  0x66   : > { %v436_v49 = vld [vmem:[#allocation5 + $0x298] sm:$0xff]  ;;  %v989_v51 = vpack.c.bf16 %v431_v45, %v429_v44  ;;  %v927_v52 = vpack.c.bf16 %v300_v47, %v298_v46  ;;  %v297_v53 = vld [vmem:[#allocation5 + $0x80] sm:$0xff]  ;;  %v299_v54 = vld [vmem:[#allocation5 + $0x90] sm:$0xff] }
  0x67   : > { %922 = vmatpush1.bf16.msra.mxu0 %v921_v34  ;;  %v433_v55 = vld [vmem:[#allocation5 + $0x280] sm:$0xff]  ;;  %v991_v56 = vpack.c.bf16 %v436_v49, %v434_v48  ;;  %v435_v57 = vld [vmem:[#allocation5 + $0x290] sm:$0xff]  ;;  %v302_v58 = vld [vmem:[#allocation5 + $0xa8] sm:$0xff]  ;;  %v929_v62 = vpack.c.bf16 %v299_v54, %v297_v53 }
  0x68   : > { %986 = vmatpush1.bf16.msra.mxu1 %v985_v38  ;;  %924 = vmatprep.subr.bf16.mxu0 %v923_v39  ;;  %v304_v59 = vld [vmem:[#allocation5 + $0xb8] sm:$0xff]  ;;  %v438_v60 = vld [vmem:[#allocation5 + $0x2a8] sm:$0xff]  ;;  %v993_v63 = vpack.c.bf16 %v435_v57, %v433_v55  ;;  %v301_v1 = vld [vmem:[#allocation5 + $0xa0] sm:$0xff] }
  0x69   : > { %988 = vmatprep.subr.bf16.mxu1 %v987_v43  ;;  %v440_v61 = vld [vmem:[#allocation5 + $0x2b8] sm:$0xff]  ;;  %v931_v0 = vpack.c.bf16 %v304_v59, %v302_v58  ;;  %v303_v2 = vld [vmem:[#allocation5 + $0xb0] sm:$0xff]  ;;  %v437_v3 = vld [vmem:[#allocation5 + $0x2a0] sm:$0xff] }
  0x6a   : > { %v995_v4 = vpack.c.bf16 %v440_v61, %v438_v60  ;;  %v439_v5 = vld [vmem:[#allocation5 + $0x2b0] sm:$0xff]  ;;  %v306_v6 = vld [vmem:[#allocation5 + $0xc8] sm:$0xff]  ;;  %v308_v7 = vld [vmem:[#allocation5 + $0xd8] sm:$0xff]  ;;  %v933_v10 = vpack.c.bf16 %v303_v2, %v301_v1 }
  0x6b   : > { %926 = vmatpush1.bf16.msra.mxu0 %v925_v50  ;;  %v442_v8 = vld [vmem:[#allocation5 + $0x2c8] sm:$0xff]  ;;  %v444_v9 = vld [vmem:[#allocation5 + $0x2d8] sm:$0xff]  ;;  %v997_v11 = vpack.c.bf16 %v439_v5, %v437_v3  ;;  %v935_v12 = vpack.c.bf16 %v308_v7, %v306_v6  ;;  %v305_v13 = vld [vmem:[#allocation5 + $0xc0] sm:$0xff] }
  0x6c   : > { %990 = vmatpush1.bf16.msra.mxu1 %v989_v51  ;;  %928 = vmatprep.subr.bf16.mxu0 %v927_v52  ;;  %v307_v14 = vld [vmem:[#allocation5 + $0xd0] sm:$0xff]  ;;  %v441_v15 = vld [vmem:[#allocation5 + $0x2c0] sm:$0xff]  ;;  %v999_v16 = vpack.c.bf16 %v444_v9, %v442_v8  ;;  %v310_v18 = vld [vmem:[#allocation5 + $0xe8] sm:$0xff] }
  0x6d   : > { %992 = vmatprep.subr.bf16.mxu1 %v991_v56  ;;  %v443_v17 = vld [vmem:[#allocation5 + $0x2d0] sm:$0xff]  ;;  %v312_v19 = vld [vmem:[#allocation5 + $0xf8] sm:$0xff]  ;;  %v446_v20 = vld [vmem:[#allocation5 + $0x2e8] sm:$0xff]  ;;  %v937_v22 = vpack.c.bf16 %v307_v14, %v305_v13 }
  0x6e   : > { %v448_v21 = vld [vmem:[#allocation5 + $0x2f8] sm:$0xff]  ;;  %v1001_v23 = vpack.c.bf16 %v443_v17, %v441_v15  ;;  %v939_v24 = vpack.c.bf16 %v312_v19, %v310_v18  ;;  %v309_v25 = vld [vmem:[#allocation5 + $0xe0] sm:$0xff]  ;;  %v311_v26 = vld [vmem:[#allocation5 + $0xf0] sm:$0xff] }
  0x6f   : > { %930 = vmatpush1.bf16.msra.mxu0 %v929_v62  ;;  %v445_v27 = vld [vmem:[#allocation5 + $0x2e0] sm:$0xff]  ;;  %v1003_v28 = vpack.c.bf16 %v448_v21, %v446_v20  ;;  %v447_v29 = vld [vmem:[#allocation5 + $0x2f0] sm:$0xff]  ;;  %v314_v30 = vld [vmem:[#allocation5 + $0x108] sm:$0xff]  ;;  %v941_v34 = vpack.c.bf16 %v311_v26, %v309_v25 }
  0x70   : > { %994 = vmatpush1.bf16.msra.mxu1 %v993_v63  ;;  %932 = vmatprep.subr.bf16.mxu0 %v931_v0  ;;  %v316_v31 = vld [vmem:[#allocation5 + $0x118] sm:$0xff]  ;;  %v450_v32 = vld [vmem:[#allocation5 + $0x308] sm:$0xff]  ;;  %v1005_v35 = vpack.c.bf16 %v447_v29, %v445_v27  ;;  %v313_v37 = vld [vmem:[#allocation5 + $0x100] sm:$0xff] }
  0x71   : > { %996 = vmatprep.subr.bf16.mxu1 %v995_v4  ;;  %v452_v33 = vld [vmem:[#allocation5 + $0x318] sm:$0xff]  ;;  %v943_v36 = vpack.c.bf16 %v316_v31, %v314_v30  ;;  %v315_v38 = vld [vmem:[#allocation5 + $0x110] sm:$0xff]  ;;  %v449_v39 = vld [vmem:[#allocation5 + $0x300] sm:$0xff] }
  0x72   : > { %v1007_v40 = vpack.c.bf16 %v452_v33, %v450_v32  ;;  %v451_v41 = vld [vmem:[#allocation5 + $0x310] sm:$0xff]  ;;  %v318_v42 = vld [vmem:[#allocation5 + $0x128] sm:$0xff]  ;;  %v320_v43 = vld [vmem:[#allocation5 + $0x138] sm:$0xff]  ;;  %v945_v46 = vpack.c.bf16 %v315_v38, %v313_v37 }
  0x73   : > { %934 = vmatpush1.bf16.msra.mxu0 %v933_v10  ;;  %v454_v44 = vld [vmem:[#allocation5 + $0x328] sm:$0xff]  ;;  %v456_v45 = vld [vmem:[#allocation5 + $0x338] sm:$0xff]  ;;  %v1009_v47 = vpack.c.bf16 %v451_v41, %v449_v39  ;;  %v947_v48 = vpack.c.bf16 %v320_v43, %v318_v42  ;;  %v317_v49 = vld [vmem:[#allocation5 + $0x120] sm:$0xff] }
  0x74   : > { %998 = vmatpush1.bf16.msra.mxu1 %v997_v11  ;;  %936 = vmatprep.subr.bf16.mxu0 %v935_v12  ;;  %v319_v50 = vld [vmem:[#allocation5 + $0x130] sm:$0xff]  ;;  %v453_v51 = vld [vmem:[#allocation5 + $0x320] sm:$0xff]  ;;  %v1011_v52 = vpack.c.bf16 %v456_v45, %v454_v44  ;;  %v322_v54 = vld [vmem:[#allocation5 + $0x148] sm:$0xff] }
  0x75   : > { %1000 = vmatprep.subr.bf16.mxu1 %v999_v16  ;;  %v455_v53 = vld [vmem:[#allocation5 + $0x330] sm:$0xff]  ;;  %v324_v55 = vld [vmem:[#allocation5 + $0x158] sm:$0xff]  ;;  %v458_v56 = vld [vmem:[#allocation5 + $0x348] sm:$0xff]  ;;  %v949_v58 = vpack.c.bf16 %v319_v50, %v317_v49 }
  0x76   : > { %v460_v57 = vld [vmem:[#allocation5 + $0x358] sm:$0xff]  ;;  %v1013_v59 = vpack.c.bf16 %v455_v53, %v453_v51  ;;  %v951_v60 = vpack.c.bf16 %v324_v55, %v322_v54  ;;  %v321_v61 = vld [vmem:[#allocation5 + $0x140] sm:$0xff]  ;;  %v323_v62 = vld [vmem:[#allocation5 + $0x150] sm:$0xff] }
  0x77   : > { %938 = vmatpush1.bf16.msra.mxu0 %v937_v22  ;;  %v457_v63 = vld [vmem:[#allocation5 + $0x340] sm:$0xff]  ;;  %v1015_v0 = vpack.c.bf16 %v460_v57, %v458_v56  ;;  %v459_v1 = vld [vmem:[#allocation5 + $0x350] sm:$0xff]  ;;  %v326_v2 = vld [vmem:[#allocation5 + $0x168] sm:$0xff]  ;;  %v953_v6 = vpack.c.bf16 %v323_v62, %v321_v61 }
  0x78   : > { %1002 = vmatpush1.bf16.msra.mxu1 %v1001_v23  ;;  %940 = vmatprep.subr.bf16.mxu0 %v939_v24  ;;  %v328_v3 = vld [vmem:[#allocation5 + $0x178] sm:$0xff]  ;;  %v462_v4 = vld [vmem:[#allocation5 + $0x368] sm:$0xff]  ;;  %v325_v7 = vld [vmem:[#allocation5 + $0x160] sm:$0xff]  ;;  %v1017_v8 = vpack.c.bf16 %v459_v1, %v457_v63 }
  0x79   : > { %1004 = vmatprep.subr.bf16.mxu1 %v1003_v28  ;;  %v464_v5 = vld [vmem:[#allocation5 + $0x378] sm:$0xff]  ;;  %v955_v9 = vpack.c.bf16 %v328_v3, %v326_v2  ;;  %v327_v10 = vld [vmem:[#allocation5 + $0x170] sm:$0xff]  ;;  %v461_v11 = vld [vmem:[#allocation5 + $0x360] sm:$0xff] }
  0x7a   : > { %v463_v12 = vld [vmem:[#allocation5 + $0x370] sm:$0xff]  ;;  %v1019_v13 = vpack.c.bf16 %v464_v5, %v462_v4  ;;  %v330_v14 = vld [vmem:[#allocation5 + $0x188] sm:$0xff]  ;;  %v332_v15 = vld [vmem:[#allocation5 + $0x198] sm:$0xff]  ;;  %v957_v19 = vpack.c.bf16 %v327_v10, %v325_v7 }
  0x7b   : > { %942 = vmatpush1.bf16.msra.mxu0 %v941_v34  ;;  %v1534_v16 = vld [vmem:[%s1523_s24 + $0x8] sm:$0xff]  ;;  %v1021_v20 = vpack.c.bf16 %v463_v12, %v461_v11  ;;  %v959_v21 = vpack.c.bf16 %v332_v15, %v330_v14  ;;  %v329_v22 = vld [vmem:[#allocation5 + $0x180] sm:$0xff]  ;;  %v331_v23 = vld [vmem:[#allocation5 + $0x190] sm:$0xff] }
  0x7c   : > { %1006 = vmatpush1.bf16.msra.mxu1 %v1005_v35  ;;  %944 = vmatprep.subr.bf16.mxu0 %v943_v36  ;;  %v466_v17 = vld [vmem:[#allocation5 + $0x388] sm:$0xff]  ;;  %v468_v18 = vld [vmem:[#allocation5 + $0x398] sm:$0xff]  ;;  %v465_v24 = vld [vmem:[#allocation5 + $0x380] sm:$0xff]  ;;  %v961_v31 = vpack.c.bf16 %v331_v23, %v329_v22 }
  0x7d   : > { %1008 = vmatprep.subr.bf16.mxu1 %v1007_v40  ;;  %409 = vmatprep.mubr.f32.mxu0 %v1534_v16  ;;  %v1023_v25 = vpack.c.bf16 %v468_v18, %v466_v17  ;;  %v467_v26 = vld [vmem:[#allocation5 + $0x390] sm:$0xff]  ;;  %v334_v27 = vld [vmem:[#allocation5 + $0x1a8] sm:$0xff]  ;;  %v336_v28 = vld [vmem:[#allocation5 + $0x1b8] sm:$0xff] }
  0x7e   : > { %545 = vmatprep.mubr.f32.mxu1 %v1534_v16  ;;  %v470_v29 = vld [vmem:[#allocation5 + $0x3a8] sm:$0xff]  ;;  %v472_v30 = vld [vmem:[#allocation5 + $0x3b8] sm:$0xff]  ;;  %v1025_v32 = vpack.c.bf16 %v467_v26, %v465_v24  ;;  %v963_v33 = vpack.c.bf16 %v336_v28, %v334_v27  ;;  %v333_v34 = vld [vmem:[#allocation5 + $0x1a0] sm:$0xff] }
  0x7f   : > { %946 = vmatpush1.bf16.msra.mxu0 %v945_v46  ;;  %v335_v35 = vld [vmem:[#allocation5 + $0x1b0] sm:$0xff]  ;;  %v469_v36 = vld [vmem:[#allocation5 + $0x3a0] sm:$0xff]  ;;  %v1027_v37 = vpack.c.bf16 %v472_v30, %v470_v29  ;;  %v338_v39 = vld [vmem:[#allocation5 + $0x1c8] sm:$0xff] }
  0x80   : > { %1010 = vmatpush1.bf16.msra.mxu1 %v1009_v47  ;;  %948 = vmatprep.subr.bf16.mxu0 %v947_v48  ;;  %v471_v38 = vld [vmem:[#allocation5 + $0x3b0] sm:$0xff]  ;;  %v340_v40 = vld [vmem:[#allocation5 + $0x1d8] sm:$0xff]  ;;  %v474_v41 = vld [vmem:[#allocation5 + $0x3c8] sm:$0xff]  ;;  %v965_v43 = vpack.c.bf16 %v335_v35, %v333_v34 }
  0x81   : > { %1012 = vmatprep.subr.bf16.mxu1 %v1011_v52  ;;  %v476_v42 = vld [vmem:[#allocation5 + $0x3d8] sm:$0xff]  ;;  %v1029_v44 = vpack.c.bf16 %v471_v38, %v469_v36  ;;  %v967_v45 = vpack.c.bf16 %v340_v40, %v338_v39  ;;  %v337_v46 = vld [vmem:[#allocation5 + $0x1c0] sm:$0xff]  ;;  %v339_v47 = vld [vmem:[#allocation5 + $0x1d0] sm:$0xff] }
  0x82   : > { %v473_v48 = vld [vmem:[#allocation5 + $0x3c0] sm:$0xff]  ;;  %v1031_v49 = vpack.c.bf16 %v476_v42, %v474_v41  ;;  %v475_v50 = vld [vmem:[#allocation5 + $0x3d0] sm:$0xff]  ;;  %v342_v51 = vld [vmem:[#allocation5 + $0x1e8] sm:$0xff]  ;;  %v969_v55 = vpack.c.bf16 %v339_v47, %v337_v46 }
  0x83   : > { %950 = vmatpush1.bf16.msra.mxu0 %v949_v58  ;;  %v344_v52 = vld [vmem:[#allocation5 + $0x1f8] sm:$0xff]  ;;  %v478_v53 = vld [vmem:[#allocation5 + $0x3e8] sm:$0xff]  ;;  %v1033_v56 = vpack.c.bf16 %v475_v50, %v473_v48  ;;  %v341_v58 = vld [vmem:[#allocation5 + $0x1e0] sm:$0xff] }
  0x84   : > { %1014 = vmatpush1.bf16.msra.mxu1 %v1013_v59  ;;  %952 = vmatprep.subr.bf16.mxu0 %v951_v60  ;;  %v480_v54 = vld [vmem:[#allocation5 + $0x3f8] sm:$0xff]  ;;  %v971_v57 = vpack.c.bf16 %v344_v52, %v342_v51  ;;  %v343_v59 = vld [vmem:[#allocation5 + $0x1f0] sm:$0xff]  ;;  %v477_v60 = vld [vmem:[#allocation5 + $0x3e0] sm:$0xff] }
  0x85   : > { %1016 = vmatprep.subr.bf16.mxu1 %v1015_v0  ;;  %v1035_v61 = vpack.c.bf16 %v480_v54, %v478_v53  ;;  %v479_v62 = vld [vmem:[#allocation5 + $0x3f0] sm:$0xff]  ;;  %v554_v63 = vld [vmem:[#allocation5 + $0x408] sm:$0xff]  ;;  %v556_v0 = vld [vmem:[#allocation5 + $0x418] sm:$0xff]  ;;  %v973_v1 = vpack.c.bf16 %v343_v59, %v341_v58 }
  0x86   : > { %v1037_v2 = vpack.c.bf16 %v479_v62, %v477_v60  ;;  %v1039_v3 = vpack.c.bf16 %v556_v0, %v554_v63  ;;  %v553_v4 = vld [vmem:[#allocation5 + $0x400] sm:$0xff]  ;;  %v555_v5 = vld [vmem:[#allocation5 + $0x410] sm:$0xff]  ;;  %v560_v7 = vld [vmem:[#allocation5 + $0x438] sm:$0xff] }
  0x87   : > { %954 = vmatpush1.bf16.msra.mxu0 %v953_v6  ;;  %v558_v6 = vld [vmem:[#allocation5 + $0x428] sm:$0xff]  ;;  %v557_v11 = vld [vmem:[#allocation5 + $0x420] sm:$0xff]  ;;  %v559_v12 = vld [vmem:[#allocation5 + $0x430] sm:$0xff] }
  0x88   : > { %1018 = vmatpush1.bf16.msra.mxu1 %v1017_v8  ;;  %956 = vmatprep.subr.bf16.mxu0 %v955_v9  ;;  %v1539_v8 = vld [vmem:[%s1523_s24] sm:$0xff]  ;;  %v1041_v9 = vpack.c.bf16 %v555_v5, %v553_v4  ;;  %v1043_v10 = vpack.c.bf16 %v560_v7, %v558_v6  ;;  %v564_v14 = vld [vmem:[#allocation5 + $0x458] sm:$0xff]  ;;  %v1045_v15 = vpack.c.bf16 %v559_v12, %v557_v11  ;;  %v570_v26 = vld [vmem:[#allocation5 + $0x488] sm:$0xff]  ;;  %s782_s24 = scalar_lea.sflag [#allocation4], %s1517_s8 }
  0x89   : > { %1020 = vmatprep.subr.bf16.mxu1 %v1019_v13  ;;  %v562_v13 = vld [vmem:[#allocation5 + $0x448] sm:$0xff]  ;;  %v561_v18 = vld [vmem:[#allocation5 + $0x440] sm:$0xff]  ;;  %v572_v27 = vld [vmem:[#allocation5 + $0x498] sm:$0xff] }
  0x8a   : > { %v1047_v17 = vpack.c.bf16 %v564_v14, %v562_v13  ;;  %v565_v24 = vld [vmem:[#allocation5 + $0x460] sm:$0xff]  ;;  %v1055_v29 = vpack.c.bf16 %v572_v27, %v570_v26  ;;  %v575_v36 = vld [vmem:[#allocation5 + $0x4b0] sm:$0xff]  ;;  %v580_v38 = vld [vmem:[#allocation5 + $0x4d8] sm:$0xff] }
  0x8b   : > { %958 = vmatpush1.bf16.msra.mxu0 %v957_v19  ;;  %v563_v19 = vld [vmem:[#allocation5 + $0x450] sm:$0xff]  ;;  %v569_v30 = vld [vmem:[#allocation5 + $0x480] sm:$0xff]  ;;  %v588_v50 = vld [vmem:[#allocation5 + $0x518] sm:$0xff] }
  0x8c   : > { %1022 = vmatpush1.bf16.msra.mxu1 %v1021_v20  ;;  %960 = vmatprep.subr.bf16.mxu0 %v959_v21  ;;  %v566_v20 = vld [vmem:[#allocation5 + $0x468] sm:$0xff]  ;;  %v568_v21 = vld [vmem:[#allocation5 + $0x478] sm:$0xff]  ;;  %v1049_v22 = vpack.c.bf16 %v563_v19, %v561_v18  ;;  %v573_v35 = vld [vmem:[#allocation5 + $0x4a0] sm:$0xff] }
  0x8d   : > { %1024 = vmatprep.subr.bf16.mxu1 %v1023_v25  ;;  %v1051_v23 = vpack.c.bf16 %v568_v21, %v566_v20  ;;  %v567_v25 = vld [vmem:[#allocation5 + $0x470] sm:$0xff]  ;;  %v1061_v39 = vpack.c.bf16 %v575_v36, %v573_v35  ;;  %v577_v41 = vld [vmem:[#allocation5 + $0x4c0] sm:$0xff]  ;;  %v596_v62 = vld [vmem:[#allocation5 + $0x558] sm:$0xff]  ;;  %v1335_v35 = vmov 0.0  }
  0x8e   : > { %v1053_v28 = vpack.c.bf16 %v567_v25, %v565_v24  ;;  %v579_v42 = vld [vmem:[#allocation5 + $0x4d0] sm:$0xff]  ;;  %v581_v47 = vld [vmem:[#allocation5 + $0x4e0] sm:$0xff]  ;;  %v600_v4 = vld [vmem:[#allocation5 + $0x578] sm:$0xff] }
  0x8f   : > { %962 = vmatpush1.bf16.msra.mxu0 %v961_v31  ;;  %v571_v31 = vld [vmem:[#allocation5 + $0x490] sm:$0xff]  ;;  %v585_v53 = vld [vmem:[#allocation5 + $0x500] sm:$0xff]  ;;  %v604_v11 = vld [vmem:[#allocation5 + $0x598] sm:$0xff] }
  0x90   : > { %1026 = vmatpush1.bf16.msra.mxu1 %v1025_v32  ;;  %964 = vmatprep.subr.bf16.mxu0 %v963_v33  ;;  %v574_v32 = vld [vmem:[#allocation5 + $0x4a8] sm:$0xff]  ;;  %v576_v33 = vld [vmem:[#allocation5 + $0x4b8] sm:$0xff]  ;;  %v583_v48 = vld [vmem:[#allocation5 + $0x4f0] sm:$0xff] }
  0x91   : > { %1028 = vmatprep.subr.bf16.mxu1 %v1027_v37  ;;  %v1059_v34 = vpack.c.bf16 %v576_v33, %v574_v32  ;;  %v578_v37 = vld [vmem:[#allocation5 + $0x4c8] sm:$0xff]  ;;  %v1069_v51 = vpack.c.bf16 %v583_v48, %v581_v47  ;;  %v587_v54 = vld [vmem:[#allocation5 + $0x510] sm:$0xff]  ;;  %v589_v59 = vld [vmem:[#allocation5 + $0x520] sm:$0xff] }
  0x92   : > { %v1063_v40 = vpack.c.bf16 %v580_v38, %v578_v37  ;;  %v591_v60 = vld [vmem:[#allocation5 + $0x530] sm:$0xff]  ;;  %v597_v7 = vld [vmem:[#allocation5 + $0x560] sm:$0xff]  ;;  %v608_v18 = vld [vmem:[#allocation5 + $0x5b8] sm:$0xff]  ;;  %v1336_v37 = vmov 0  }
  0x93   : > { %966 = vmatpush1.bf16.msra.mxu0 %v965_v43  ;;  %v582_v43 = vld [vmem:[#allocation5 + $0x4e8] sm:$0xff]  ;;  %v1077_v63 = vpack.c.bf16 %v591_v60, %v589_v59  ;;  %v601_v14 = vld [vmem:[#allocation5 + $0x580] sm:$0xff]  ;;  %v612_v24 = vld [vmem:[#allocation5 + $0x5d8] sm:$0xff]  ;;  %1184 = vset.pattern.permute.xlu0 %v1336_v37 }
  0x94   : > { %1030 = vmatpush1.bf16.msra.mxu1 %v1029_v44  ;;  %968 = vmatprep.subr.bf16.mxu0 %v967_v45  ;;  %v584_v44 = vld [vmem:[#allocation5 + $0x4f8] sm:$0xff]  ;;  %v1065_v45 = vpack.c.bf16 %v579_v42, %v577_v41  ;;  %v605_v21 = vld [vmem:[#allocation5 + $0x5a0] sm:$0xff] }
  0x95   : > { %1032 = vmatprep.subr.bf16.mxu1 %v1031_v49  ;;  %v1067_v46 = vpack.c.bf16 %v584_v44, %v582_v43  ;;  %v586_v49 = vld [vmem:[#allocation5 + $0x508] sm:$0xff]  ;;  %v609_v27 = vld [vmem:[#allocation5 + $0x5c0] sm:$0xff] }
  0x96   : > { %v1071_v52 = vpack.c.bf16 %v588_v50, %v586_v49  ;;  %v613_v33 = vld [vmem:[#allocation5 + $0x5e0] sm:$0xff] }
  0x97   : > { %970 = vmatpush1.bf16.msra.mxu0 %v969_v55  ;;  %v590_v55 = vld [vmem:[#allocation5 + $0x528] sm:$0xff]  ;;  %v273_v36 = vld [vmem:[%s1612_s3] sm:$0xff] }
  0x98   : > { %1034 = vmatpush1.bf16.msra.mxu1 %v1033_v56  ;;  %972 = vmatprep.subr.bf16.mxu0 %v971_v57  ;;  %v592_v56 = vld [vmem:[#allocation5 + $0x538] sm:$0xff]  ;;  %v1073_v57 = vpack.c.bf16 %v587_v54, %v585_v53  ;;  %v274_v38 = vld [vmem:[%s1613_s4] sm:$0xff] }
  0x99   : > { %1036 = vmatprep.subr.bf16.mxu1 %v1035_v61  ;;  %v1075_v58 = vpack.c.bf16 %v592_v56, %v590_v55  ;;  %v594_v61 = vld [vmem:[#allocation5 + $0x548] sm:$0xff]  ;;  %765 = vperm.xlu0 %1184, %v273_v36  }
  0x9a   : > { %v1079_v0 = vpack.c.bf16 %v596_v62, %v594_v61 }
  0x9b   : > { %974 = vmatpush1.bf16.msra.mxu0 %v973_v1  ;;  %v593_v1 = vld [vmem:[#allocation5 + $0x540] sm:$0xff] }
  0x9c   : > { %1038 = vmatpush1.bf16.msra.mxu1 %v1037_v2  ;;  %1040 = vmatprep.subr.bf16.mxu0 %v1039_v3  ;;  %v595_v2 = vld [vmem:[#allocation5 + $0x550] sm:$0xff]  ;;  %v598_v3 = vld [vmem:[#allocation5 + $0x568] sm:$0xff] }
  0x9d   : > { %v1081_v5 = vpack.c.bf16 %v595_v2, %v593_v1  ;;  %v1083_v6 = vpack.c.bf16 %v600_v4, %v598_v3  ;;  %772 = vperm.xlu0 %1184, %v274_v38  }
  0x9e   : > { %410 = vmatmul.mubr.f32.vlgmr.msra.gmra.mrb[0].mxu0 %v1539_v8 }
  0x9f   : > { %546 = vmatmul.mubr.f32.vlgmr.msra.gmra.mrb[0].mxu1 %v1539_v8  ;;  %1042 = vmatpush1.bf16.msra.mxu0 %v1041_v9  ;;  %v599_v9 = vld [vmem:[#allocation5 + $0x570] sm:$0xff] }
  0xa0   : > { %1044 = vmatprep.subr.bf16.mxu0 %v1043_v10  ;;  %681 = vmatprep.mubr.f32.mxu0 %v1534_v16  ;;  %v1057_v16 = vpack.c.bf16 %v571_v31, %v569_v30  ;;  %v602_v10 = vld [vmem:[#allocation5 + $0x588] sm:$0xff]  ;;  %v1085_v12 = vpack.c.bf16 %v599_v9, %v597_v7  ;;  %v616_v30 = vld [vmem:[#allocation5 + $0x5f8] sm:$0xff] }
  0xa1   : > { %v1087_v13 = vpack.c.bf16 %v604_v11, %v602_v10  ;;  %756 = vmatprep.mubr.f32.mxu1 %v1335_v35 }
  0xa3   : > { %1046 = vmatpush1.bf16.msra.mxu0 %v1045_v15  ;;  %v603_v15 = vld [vmem:[#allocation5 + $0x590] sm:$0xff] }
  0xa4   : > { %1048 = vmatprep.subr.bf16.mxu0 %v1047_v17  ;;  %v606_v17 = vld [vmem:[#allocation5 + $0x5a8] sm:$0xff]  ;;  %v1089_v19 = vpack.c.bf16 %v603_v15, %v601_v14 }
  0xa5   : > { %v1091_v20 = vpack.c.bf16 %v608_v18, %v606_v17 }
  0xa7   : > { %1050 = vmatpush1.bf16.msra.mxu0 %v1049_v22  ;;  %v607_v22 = vld [vmem:[#allocation5 + $0x5b0] sm:$0xff] }
  0xa8   : > { %1052 = vmatprep.subr.bf16.mxu0 %v1051_v23  ;;  %v610_v23 = vld [vmem:[#allocation5 + $0x5c8] sm:$0xff]  ;;  %v1093_v25 = vpack.c.bf16 %v607_v22, %v605_v21 }
  0xa9   : > { %v1095_v26 = vpack.c.bf16 %v612_v24, %v610_v23 }
  0xab   : > { %1054 = vmatpush1.bf16.msra.mxu0 %v1053_v28  ;;  %v611_v28 = vld [vmem:[#allocation5 + $0x5d0] sm:$0xff] }
  0xac   : > { %1056 = vmatprep.subr.bf16.mxu0 %v1055_v29  ;;  %v614_v29 = vld [vmem:[#allocation5 + $0x5e8] sm:$0xff]  ;;  %v1097_v31 = vpack.c.bf16 %v611_v28, %v609_v27 }
  0xad   : > { %v1099_v32 = vpack.c.bf16 %v616_v30, %v614_v29 }
  0xaf   : > { %1058 = vmatpush1.bf16.msra.mxu0 %v1057_v16  ;;  %v615_v16 = vld [vmem:[#allocation5 + $0x5f0] sm:$0xff] }
  0xb0   : > { %1060 = vmatprep.subr.bf16.mxu0 %v1059_v34  ;;  %v1101_v34 = vpack.c.bf16 %v615_v16, %v613_v33 }
  0xb3   : > { %1062 = vmatpush1.bf16.msra.mxu0 %v1061_v39 }
  0xb4   : > { %1064 = vmatprep.subr.bf16.mxu0 %v1063_v40 }
  0xb7   : > { %1066 = vmatpush1.bf16.msra.mxu0 %v1065_v45 }
  0xb8   : > { %1068 = vmatprep.subr.bf16.mxu0 %v1067_v46  ;;  %v272_v46 = vld [vmem:[%s1611_s2] sm:$0xff] }
  0xbb   : > { %1070 = vmatpush1.bf16.msra.mxu0 %v1069_v51 }
  0xbc   : > { %1072 = vmatprep.subr.bf16.mxu0 %v1071_v52 }
  0xbf   : > { %1074 = vmatpush1.bf16.msra.mxu0 %v1073_v57 }
  0xc0   : > { %1076 = vmatprep.subr.bf16.mxu0 %v1075_v58 }
  0xc3   : > { %1078 = vmatpush1.bf16.msra.mxu0 %v1077_v63 }
  0xc4   : > { %1080 = vmatprep.subr.bf16.mxu0 %v1079_v0 }
  0xc7   : > { %1082 = vmatpush1.bf16.msra.mxu0 %v1081_v5 }
  0xc8   : > { %1084 = vmatprep.subr.bf16.mxu0 %v1083_v6 }
  0xcb   : > { %1086 = vmatpush1.bf16.msra.mxu0 %v1085_v12 }
  0xcc   : > { %1088 = vmatprep.subr.bf16.mxu0 %v1087_v13 }
  0xcf   : > { %1090 = vmatpush1.bf16.msra.mxu0 %v1089_v19 }
  0xd0   : > { %1092 = vmatprep.subr.bf16.mxu0 %v1091_v20 }
  0xd3   : > { %1094 = vmatpush1.bf16.msra.mxu0 %v1093_v25 }
  0xd4   : > { %1096 = vmatprep.subr.bf16.mxu0 %v1095_v26 }
  0xd7   : > { %1098 = vmatpush1.bf16.msra.mxu0 %v1097_v31 }
  0xd8   : > { %1100 = vmatprep.subr.bf16.mxu0 %v1099_v32 }
  0xdb   : > { %1102 = vmatpush1.bf16.msra.mxu0 %v1101_v34 }
  0xde   : > { %682 = vmatmul.mubr.f32.vlgmr.msra.gmra.mrb[2].mxu0 %v1539_v8 }
 0x118   : > { %v766_v47 = vpop.permute.xlu0 %765 }
 0x11c   : > { %v773_v51 = vpop.permute.xlu0 %772 }
 0x171   : > { %v411_v39 = vpop.f32.mrb[0].mxu0 }
 0x172   : > { %v547_v40 = vpop.f32.mrb[0].mxu1  ;;  %v413_v41 = vpop.f32.mrb[1].mxu0 }
 0x173   : > { %v1105_v42 = vpack.c.bf16 %v547_v40, %v411_v39  ;;  %v549_v43 = vpop.f32.mrb[1].mxu1 }
 0x174   : > { %v1103_v8 = vpack.c.bf16 %v549_v43, %v413_v41 }
 0x176   : > { %1104 = vmatprep.subr.bf16.mxu1 %v1103_v8 }
 0x177   : > { %1106 = vmatpush1.bf16.msra.mxu1 %v1105_v42 }
 0x1b1   : > { %v683_v44 = vpop.f32.mrb[2].mxu0 }
 0x1b2   : > { %v685_v45 = vpop.f32.mrb[3].mxu0 }
 0x1b3   : > { %696 = vmatprep.subr.mxu1 %v685_v45 }
 0x1b4   : > { %697 = vmatpush1.msra.mxu1 %v683_v44 }
 0x1b5   : > { %903 = vmatmul.mubr.msk.f32.vlgmr.msra.gmra.mrb[2].mxu1 %vm688_vm0, %v272_v46 }
 0x288   : > { %v758_v48 = vpop.f32.mrb[2].mxu1 }
 0x289   : > { %v768_v49 = vmul.f32 %v766_v47, %v758_v48  ;;  %v760_v50 = vpop.f32.mrb[3].mxu1 }
 0x28a   : > { %v769_v52 = vmul.f32 %v766_v47, %v760_v50 }
 0x28b   : > { %v775_v53 = vadd.f32 %v773_v51, %v768_v49 }
 0x28c   : > { %v776_v54 = vadd.f32 %v773_v51, %v769_v52 }
 0x28d   : > { %v777_v55 = vmax.f32 %v775_v53, 0.0 }
 0x28e   : > { %v778_v56 = vmax.f32 %v776_v54, 0.0 }
 0x28f   : > { %779 = vst [vmem:[%s269_s7] sm:$0xff] %v777_v55 }
 0x290   : > { %780 = vst [vmem:[%s269_s7 + $0x8] sm:$0xff] %v778_v56 }
 0x291   : > { %1256 = shalt.err (!%p1253_p5)
}
 0x292   : > { %s1257_s8 = scalar_lea.hbm %s1560_s12, 256  ;;  %s1261_s6 = scalar_lea.hbm %s1614_s5, 512 }
 0x293   : > { %p1258_p9 = scmp.ne.s32.totalorder %s1560_s12, %s1257_s8  ;;  %p1262_p7 = scmp.lt.u32.totalorder %s1560_s12, %s1614_s5 }
 0x294   : > { %p1263_p3 = scmp.lt.u32.totalorder %s1261_s6, %s1257_s8  ;;  %p1265_p4 = scmp.lt.u32.totalorder %s1257_s8, %s1560_s12 }
 0x295   : > { %p1259_p1 = pnand %p1258_p9, %p1464_p10 }
 0x296   : > { %p1264_p13 = por %p1263_p3, %p1262_p7 }
 0x297   : > { %p1260_p2 = pneg %p1259_p1 }
 0x298   : > { %p1266_p6 = por %p1265_p4, %p1264_p13 }
 0x29a   : > { %p1267_p8 = pnand %p1266_p6, %p1260_p2 }
 0x29c   : > { %1270 = shalt.err (!%p1267_p8)
}
 0x29d   : > { %1113 = dma.vmem_to_hbm [thread:$0]  (%p1464_p10), %s1562_s27, 256, %s1560_s12, %s782_s24  }
 0x29e PF: > { %s810_s7 = sand.u32 1, %s1309_s18   ;;  %p1632_p12 = scmp.ne.s32.totalorder %s1622_s29, 0 }
 0x29f   : > { %p1633_p11 = scmp.ge.s32.totalorder %s1329_s23, 2  ;;  %s811_s14 = scalar_lea.sflag [#allocation4], %s810_s7 }
 0x2a1   : > { %p1124_p0 = pnand %p1633_p11, %p1632_p12 }
 0x2a3   : > { %1304 = dma.done.wait (!%p1124_p0), %s811_s14, 256  }
 0x2a4   : > { %1306 = vsyncadd (!%p1124_p0), %s811_s14, 4294967040  ;;  %s22_s23 = sadd.s32 1, %s1329_s23   ;;  %s1634_s18 = smov %s1313_s19 }
 0x2a5   : > { %p19_p5 = scmp.ge.s32.totalorder %s22_s23, 4   ;;  %s1635_s19 = smov %s1317_s20 }
 0x2a6   : > { %s1636_s20 = smov %s1473_s15  ;;  %s1637_s21 = smov %s1325_s22 }
 0x2a7   : > { %s1638_s22 = smov %s1640_s9  ;;  %21 = sbr.rel (!%p19_p5) target bundleno = 7 (0x7), region = 92 }
 0x2ae   :  { %816 = vsyncpa [#allocation3], 1 }
 0x2af   :  { %818 = vsyncpa [#allocation3 + $0x1], 1 }
 0x2b0   :  { %819 = vsyncpa [#allocation6], 1 }
 0x2b1   :  { %820 = vsyncpa [#allocation4], 1 }
 0x2b2   :  { %822 = vsyncpa [#allocation4 + $0x1], 1 }

</bundles_post_ra>
